<compile_context>
chip_gen: v7x
topology: tpu7x:2x2x1
jax: 0.10.0
libtpu: 0.0.40
codegen_flags: <defaults>
</compile_context>

<pallas_src>
import jax
import jax.numpy as jnp
from jax.experimental import pallas as pl
from jax.experimental.pallas import tpu as pltpu

# ---- model hyper-parameters (small, consistent with the module) -------------
B = 2          # batch
N = 16         # sequence length
D = 32         # model dim
HEADS = 4
DIM_HEAD = 16
INNER = HEADS * DIM_HEAD
LN_EPS = 1e-5


def _kernel(x_ref, c_ref, w3_ref, bias_ref, o_ref):
    heads = w3_ref.shape[0]
    bn, d = x_ref.shape

    x = x_ref[...].astype(jnp.float32)                         # (B*N, D)

    # --- LayerNorm statistics only (gamma/beta are folded into w3/bias) ------
    mean = jnp.mean(x, axis=-1, keepdims=True)
    xc = x - mean
    var = jnp.mean(xc * xc, axis=-1, keepdims=True)
    xn = xc * jax.lax.rsqrt(var + LN_EPS)                      # (B*N, D)

    # --- per-head fused feature mix: Y_h = xn @ W_h (one small batched matmul)
    xb = jnp.broadcast_to(xn[None, :, :], (heads, bn, d))      # (H, B*N, D)
    y3 = jax.lax.dot_general(
        xb, w3_ref[...],
        dimension_numbers=(((2,), (1,)), ((0,), (0,))),
        preferred_element_type=jnp.float32)                    # (H, B*N, D)
    y_stack = y3.reshape(heads * bn, d)                        # free leading-axis merge

    # --- fused causal decay + head reduction: ONE K = heads*B*N MXU matmul ---
    #     c_cat is the lane-dense (B*N, heads*B*N) operand.
    out = jnp.dot(c_ref[...], y_stack,
                  preferred_element_type=jnp.float32) + bias_ref[...]
    o_ref[...] = out.astype(o_ref.dtype)


def multihead_exp_time_decay(x, gamma, beta, w_in, w_out, alpha_sig):
    """x: (B, N, D) float32. w_in: (D, INNER), w_out: (INNER, D).
    alpha_sig: (HEADS,) = sigmoid(alpha parameter)."""
    b, n, d = x.shape
    bn = b * n
    inner = w_in.shape[1]
    heads = alpha_sig.shape[0]
    dim_head = inner // heads

    # --- wrapper-side precompute (cheap XLA glue) -----------------------------
    # Per-head causal decay matrix: decay[h, k, j] = a_h * (1 - a_h)^(k-j), k >= j.
    idx = jnp.arange(n)
    diff = idx[:, None] - idx[None, :]
    mask = diff >= 0
    safe_diff = jnp.where(mask, diff, 0).astype(jnp.float32)
    a = alpha_sig[:, None, None]
    decay = jnp.where(mask[None], a * (1.0 - a) ** safe_diff[None], 0.0)
    decay = decay.astype(jnp.float32)                          # (H, N, N)

    # Block-diagonal over the batch, then head-concatenated along the lane axis:
    #   c_cat[r, h*bn + s] = blockdiag_B(decay_h)[r, s]   -> (B*N, H*B*N) = (32, 128)
    eye_b = jnp.eye(b, dtype=jnp.float32)
    c3 = jnp.einsum('hkj,bp->hbkpj', decay, eye_b).reshape(heads, bn, bn)
    c_cat = jnp.transpose(c3, (1, 0, 2)).reshape(bn, heads * bn).astype(jnp.float32)

    # Fuse project_in ∘ head split/merge ∘ project_out into per-head (D, D) weights
    # and fold the LayerNorm affine: scale (gamma) into the weights, shift (beta)
    # into an additive output bias scaled by the decay row-sums (exact).
    win_h = w_in.reshape(d, heads, dim_head)                   # columns are (h, dh)-ordered
    wout_h = w_out.reshape(heads, dim_head, d)                 # rows are (h, dh)-ordered
    w_prime = jnp.einsum('dhk,hkc->hdc', win_h, wout_h)        # (H, D, D) = Win_h @ Wout_h
    w3 = (gamma[None, :, None] * w_prime).astype(jnp.float32)  # diag(gamma) @ Win_h @ Wout_h

    row_sums = decay.sum(axis=-1)                              # (H, N)
    beta_w = jnp.einsum('d,hdc->hc', beta, w_prime)            # (H, D) = beta @ Win_h @ Wout_h
    bias = jnp.tile(jnp.einsum('hn,hc->nc', row_sums, beta_w), (b, 1)).astype(jnp.float32)  # (B*N, D)

    x2 = x.reshape(bn, d)

    out2 = pl.pallas_call(
        _kernel,
        out_shape=jax.ShapeDtypeStruct((bn, d), x.dtype),
        grid_spec=pltpu.PrefetchScalarGridSpec(
            num_scalar_prefetch=0,
            grid=(1,),                                          # whole problem in one step
            in_specs=[
                pl.BlockSpec((bn, d), lambda i: (0, 0)),                  # x (batch folded)
                pl.BlockSpec((bn, heads * bn), lambda i: (0, 0)),         # lane-dense decay c_cat
                pl.BlockSpec((heads, d, d), lambda i: (0, 0, 0)),         # fused per-head weights
                pl.BlockSpec((bn, d), lambda i: (0, 0)),                  # folded beta bias
            ],
            out_specs=pl.BlockSpec((bn, d), lambda i: (0, 0)),
        ),
        compiler_params=pltpu.CompilerParams(
            dimension_semantics=("arbitrary",)),
    )(x2, c_cat, w3, bias)

    return out2.reshape(b, n, d)


def reference(x, gamma, beta, w_in, w_out, alpha_sig):
    b, n, d = x.shape
    mean = x.mean(-1, keepdims=True)
    var = ((x - mean) ** 2).mean(-1, keepdims=True)
    xn = (x - mean) / jnp.sqrt(var + LN_EPS) * gamma + beta
    v = xn @ w_in                                                 # (B, N, INNER)
    v = v.reshape(b, n, HEADS, DIM_HEAD).transpose(0, 2, 1, 3)    # (B, H, N, dh)
    idx = jnp.arange(n)
    diff = idx[:, None] - idx[None, :]
    mask = diff >= 0
    a = alpha_sig[:, None, None]
    Dm = jnp.where(mask[None],
                   a * (1.0 - a) ** jnp.where(mask, diff, 0)[None].astype(jnp.float32),
                   0.0)
    y = jnp.einsum('hkj,bhjd->bhkd', Dm, v)
    y = y.transpose(0, 2, 1, 3).reshape(b, n, HEADS * DIM_HEAD)
    return y @ w_out


if __name__ == "__main__":
    key = jax.random.PRNGKey(0)
    k_x, k_a, k_win, k_wout, k_g, k_b = jax.random.split(key, 6)

    x = jax.random.normal(k_x, (B, N, D), dtype=jnp.float32)

    # Deterministic parameter init (shapes per nn.Module __init__):
    alpha_param = jax.random.normal(k_a, (HEADS,), dtype=jnp.float32)   # nn.Parameter(randn(heads))
    alpha_sig = jax.nn.sigmoid(alpha_param)
    # Random (non-trivial) LayerNorm affine so the gamma/beta folding path is exercised.
    gamma = 1.0 + 0.3 * jax.random.normal(k_g, (D,), dtype=jnp.float32)
    beta = 0.3 * jax.random.normal(k_b, (D,), dtype=jnp.float32)
    # nn.Linear stores (out, in); we pass the transposed (in, out) matrices.
    w_in = (jax.random.normal(k_win, (INNER, D), dtype=jnp.float32) * 0.05).T
    w_out = (jax.random.normal(k_wout, (D, INNER), dtype=jnp.float32) * 0.05).T

    out = multihead_exp_time_decay(x, gamma, beta, w_in, w_out, alpha_sig)
    out = jax.block_until_ready(out)

    ref = reference(x, gamma, beta, w_in, w_out, alpha_sig)
    assert out.shape == (B, N, D)
    assert jnp.allclose(out, ref, atol=1e-4, rtol=1e-4), "mismatch vs reference"

    print("KERNEL_OK")
</pallas_src>

<mosaic_0001>
module attributes {stable_mosaic.version = 11 : i64} {
  func.func @_kernel(%arg0: i32, %arg1: memref<32x32xf32, #tpu.memory_space<vmem>>, %arg2: memref<32x128xf32, #tpu.memory_space<vmem>>, %arg3: memref<4x32x32xf32, #tpu.memory_space<vmem>>, %arg4: memref<32x32xf32, #tpu.memory_space<vmem>>, %arg5: memref<32x32xf32, #tpu.memory_space<vmem>>) attributes {dimension_semantics = [#tpu.dimension_semantics<arbitrary>], iteration_bounds = array<i64: 1>, scalar_prefetch = 0 : i64, scratch_operands = 0 : i64, tpu.core_type = #tpu.core_type<tc>, window_params = [{pipeline_mode = #tpu.pipeline_mode<synchronous>, transform_indices = @transform_0, window_bounds = array<i64: 32, 32>}, {pipeline_mode = #tpu.pipeline_mode<synchronous>, transform_indices = @transform_1, window_bounds = array<i64: 32, 128>}, {pipeline_mode = #tpu.pipeline_mode<synchronous>, transform_indices = @transform_2, window_bounds = array<i64: 4, 32, 32>}, {pipeline_mode = #tpu.pipeline_mode<synchronous>, transform_indices = @transform_3, window_bounds = array<i64: 32, 32>}, {pipeline_mode = #tpu.pipeline_mode<synchronous>, transform_indices = @transform_4, window_bounds = array<i64: 32, 32>}]} {
    %c0 = arith.constant 0 : index
    %c0_0 = arith.constant 0 : index
    %0 = vector.load %arg1[%c0, %c0_0] : memref<32x32xf32, #tpu.memory_space<vmem>>, vector<32x32xf32>
    %cst = arith.constant dense<0.000000e+00> : vector<32xf32>
    %1 = vector.multi_reduction <add>, %0, %cst [1] : vector<32x32xf32> to vector<32xf32>
    %2 = vector.shape_cast %1 : vector<32xf32> to vector<32x1xf32>
    %cst_1 = arith.constant 3.200000e+01 : f32
    %3 = vector.broadcast %cst_1 : f32 to vector<32x1xf32>
    %4 = arith.divf %2, %3 : vector<32x1xf32>
    %5 = vector.broadcast %4 : vector<32x1xf32> to vector<32x32xf32>
    %6 = arith.subf %0, %5 : vector<32x32xf32>
    %7 = arith.mulf %6, %6 : vector<32x32xf32>
    %cst_2 = arith.constant dense<0.000000e+00> : vector<32xf32>
    %8 = vector.multi_reduction <add>, %7, %cst_2 [1] : vector<32x32xf32> to vector<32xf32>
    %9 = vector.shape_cast %8 : vector<32xf32> to vector<32x1xf32>
    %cst_3 = arith.constant 3.200000e+01 : f32
    %10 = vector.broadcast %cst_3 : f32 to vector<32x1xf32>
    %11 = arith.divf %9, %10 : vector<32x1xf32>
    %cst_4 = arith.constant 9.99999974E-6 : f32
    %12 = vector.broadcast %cst_4 : f32 to vector<32x1xf32>
    %13 = arith.addf %11, %12 : vector<32x1xf32>
    %14 = math.rsqrt %13 : vector<32x1xf32>
    %15 = vector.broadcast %14 : vector<32x1xf32> to vector<32x32xf32>
    %16 = arith.mulf %6, %15 : vector<32x32xf32>
    %17 = vector.shape_cast %16 : vector<32x32xf32> to vector<1x32x32xf32>
    %18 = vector.shape_cast %17 : vector<1x32x32xf32> to vector<1x32x32xf32>
    %19 = vector.broadcast %18 : vector<1x32x32xf32> to vector<4x32x32xf32>
    %c0_5 = arith.constant 0 : index
    %c0_6 = arith.constant 0 : index
    %c0_7 = arith.constant 0 : index
    %20 = vector.load %arg3[%c0_5, %c0_6, %c0_7] : memref<4x32x32xf32, #tpu.memory_space<vmem>>, vector<4x32x32xf32>
    %cst_8 = arith.constant dense<0.000000e+00> : vector<4x32x32xf32>
    %21 = tpu.matmul %19, %20, %cst_8 {dimension_numbers = #tpu.dot_dimension_numbers<[2], [1], [1], [2], [0, 0, 0, 1, 1, 2], [0], [0]>} : vector<4x32x32xf32>, vector<4x32x32xf32>, vector<4x32x32xf32> -> vector<4x32x32xf32>
    %22 = vector.shape_cast %21 : vector<4x32x32xf32> to vector<128x32xf32>
    %c0_9 = arith.constant 0 : index
    %c0_10 = arith.constant 0 : index
    %23 = vector.load %arg2[%c0_9, %c0_10] : memref<32x128xf32, #tpu.memory_space<vmem>>, vector<32x128xf32>
    %cst_11 = arith.constant dense<0.000000e+00> : vector<32x32xf32>
    %24 = tpu.matmul %23, %22, %cst_11 {dimension_numbers = #tpu.dot_dimension_numbers<[1], [0], [0], [1], [0, 0, 1, 1], [], []>} : vector<32x128xf32>, vector<128x32xf32>, vector<32x32xf32> -> vector<32x32xf32>
    %c0_12 = arith.constant 0 : index
    %c0_13 = arith.constant 0 : index
    %25 = vector.load %arg4[%c0_12, %c0_13] : memref<32x32xf32, #tpu.memory_space<vmem>>, vector<32x32xf32>
    %26 = arith.addf %24, %25 : vector<32x32xf32>
    %c0_14 = arith.constant 0 : index
    %c0_15 = arith.constant 0 : index
    %27 = vector.load %arg5[%c0_14, %c0_15] : memref<32x32xf32, #tpu.memory_space<vmem>>, vector<32x32xf32>
    tpu.vector_store %arg5[%c0_14, %c0_15], %26 {strides = array<i32>} : memref<32x32xf32, #tpu.memory_space<vmem>>, vector<32x32xf32>,
    return
  }
  func.func @transform_0(%arg0: i32) -> (i32, i32) {
    %c0_i32 = arith.constant 0 : i32
    %c0_i32_0 = arith.constant 0 : i32
    %c0_i32_1 = arith.constant 0 : i32
    return %c0_i32, %c0_i32_0 : i32, i32
  }
  func.func @transform_1(%arg0: i32) -> (i32, i32) {
    %c0_i32 = arith.constant 0 : i32
    %c0_i32_0 = arith.constant 0 : i32
    %c0_i32_1 = arith.constant 0 : i32
    return %c0_i32, %c0_i32_0 : i32, i32
  }
  func.func @transform_2(%arg0: i32) -> (i32, i32, i32) {
    %c0_i32 = arith.constant 0 : i32
    %c0_i32_0 = arith.constant 0 : i32
    %c0_i32_1 = arith.constant 0 : i32
    %c0_i32_2 = arith.constant 0 : i32
    return %c0_i32, %c0_i32_0, %c0_i32_1 : i32, i32, i32
  }
  func.func @transform_3(%arg0: i32) -> (i32, i32) {
    %c0_i32 = arith.constant 0 : i32
    %c0_i32_0 = arith.constant 0 : i32
    %c0_i32_1 = arith.constant 0 : i32
    return %c0_i32, %c0_i32_0 : i32, i32
  }
  func.func @transform_4(%arg0: i32) -> (i32, i32) {
    %c0_i32 = arith.constant 0 : i32
    %c0_i32_0 = arith.constant 0 : i32
    %c0_i32_1 = arith.constant 0 : i32
    return %c0_i32, %c0_i32_0 : i32, i32
  }
}

</mosaic_0001>

<bundles_post_ra>
// kernel: tpu_custom_call.1
= control target key start
LH: loop header
LB: loop body
LE: loop exit
PB: predicated region body
PF: predicated region fallthrough
CT: control target
= control target key end

     0   :  { %9 = vsyncpa [#allocation3], 0  ;;  %s1123_s0 = inlined_call_operand.hbm [shape: f32[32,32], index: 0, kind: input, shape index: {}]   ;;  %s1124_s1 = inlined_call_operand.hbm [shape: f32[32,128], index: 1, kind: input, shape index: {}]   ;;  %s1125_s2 = inlined_call_operand.hbm [shape: f32[4,32,32], index: 2, kind: input, shape index: {}]   ;;  %s1126_s3 = inlined_call_operand.hbm [shape: f32[32,32], index: 3, kind: input, shape index: {}]   ;;  %s1127_s4 = inlined_call_operand.hbm [shape: f32[32,32], index: 4, kind: output, shape index: {}]  }
   0x1   :  { %10 = vsyncpa [#allocation6], 0 }
   0x2   :  { %11 = vsyncpa [#allocation9], 0 }
   0x3   :  { %12 = vsyncpa [#allocation4], 0  ;;  %s974_s15 = smov [#allocation5]   ;;  %s975_s17 = smov [#allocation2]  }
   0x4   :  { %s30_s16 = sshll.u32 %s974_s15, 4  ;;  %s18_s18 = sshll.u32 %s975_s17, 4  ;;  %s31_s16 = int_to_ptr.vmem [resolvable:$true] %s30_s16  ;;  %s1006_s18 = int_to_ptr.vmem [resolvable:$true] %s18_s18 }
   0x5   :  { %s856_s21 = scalar_lea.hbm %s1124_s1, 512 }
   0x6   :  { %p857_p0 = scmp.ne.s32.totalorder %s1124_s1, %s856_s21  ;;  %p860_p1 = scmp.lt.u32.totalorder %s856_s21, %s1124_s1 }
   0x8   :  { %p862_p2 = pnand %p860_p1, %p857_p0 }
   0xa   :  { %865 = shalt.err (!%p862_p2)
}
   0xb   :  { %s866_s26 = scalar_lea.vmem %s31_s16, 512  ;;  %p871_p4 = scmp.lt.s32.totalorder %s31_s16, %s31_s16 }
   0xc   :  { %p867_p3 = scmp.ne.s32.totalorder %s31_s16, %s866_s26  ;;  %p872_p5 = scmp.lt.s32.totalorder %s866_s26, %s866_s26 }
   0xe   :  { %p873_p6 = por %p872_p5, %p871_p4 }
  0x10   :  { %p874_p7 = pnand %p873_p6, %p867_p3 }
  0x12   :  { %877 = shalt.err (!%p874_p7)
}
  0x13   :  { %s976_s27 = smov 128   ;;  %s977_s28 = smov 8  }
  0x14   :  { %36 = dma.hbm_to_vmem [thread:$0]  %s1124_s1, 512, %s31_s16, [#allocation6], %s976_s27, %s976_s27, %s977_s28  }
  0x15   :  { %s878_s7 = scalar_lea.hbm %s1123_s0, 512 }
  0x16   :  { %p879_p8 = scmp.ne.s32.totalorder %s1123_s0, %s878_s7  ;;  %p882_p9 = scmp.lt.u32.totalorder %s878_s7, %s1123_s0 }
  0x18   :  { %p884_p10 = pnand %p882_p9, %p879_p8 }
  0x1a   :  { %887 = shalt.err (!%p884_p10)
}
  0x1b   :  { %s888_s12 = scalar_lea.vmem %s1006_s18, 512  ;;  %p893_p12 = scmp.lt.s32.totalorder %s1006_s18, %s1006_s18 }
  0x1c   :  { %p889_p11 = scmp.ne.s32.totalorder %s1006_s18, %s888_s12  ;;  %p894_p13 = scmp.lt.s32.totalorder %s888_s12, %s888_s12 }
  0x1e   :  { %p895_p0 = por %p894_p13, %p893_p12 }
  0x20   :  { %p896_p1 = pnand %p895_p0, %p889_p11 }
  0x22   :  { %899 = shalt.err (!%p896_p1)
}
  0x23   :  { %24 = dma.hbm_to_vmem [thread:$0]  %s1123_s0, 512, %s1006_s18, [#allocation3], %s976_s27, %s976_s27, %s977_s28  }
  0x24   :  { %s978_s14 = smov [#allocation7]   ;;  %s979_s16 = smov [#allocation8]  }
  0x25   :  { %s42_s15 = sshll.u32 %s978_s14, 4  ;;  %s54_s17 = sshll.u32 %s979_s16, 4  ;;  %s43_s15 = int_to_ptr.vmem [resolvable:$true] %s42_s15  ;;  %s1043_s17 = int_to_ptr.vmem [resolvable:$true] %s54_s17 }
  0x26   :  { %s900_s21 = scalar_lea.hbm %s1125_s2, 2048 }
  0x27   :  { %p901_p2 = scmp.ne.s32.totalorder %s1125_s2, %s900_s21  ;;  %p904_p3 = scmp.lt.u32.totalorder %s900_s21, %s1125_s2 }
  0x29   :  { %p906_p4 = pnand %p904_p3, %p901_p2 }
  0x2b   :  { %909 = shalt.err (!%p906_p4)
}
  0x2c   :  { %s910_s0 = scalar_lea.vmem %s43_s15, 2048  ;;  %p915_p6 = scmp.lt.s32.totalorder %s43_s15, %s43_s15 }
  0x2d   :  { %p911_p5 = scmp.ne.s32.totalorder %s43_s15, %s910_s0  ;;  %p916_p7 = scmp.lt.s32.totalorder %s910_s0, %s910_s0 }
  0x2f   :  { %p917_p8 = por %p916_p7, %p915_p6 }
  0x31   :  { %p918_p9 = pnand %p917_p8, %p911_p5 }
  0x33   :  { %921 = shalt.err (!%p918_p9)
}
  0x34   :  { %48 = dma.hbm_to_vmem [thread:$0]  %s1125_s2, 2048, %s43_s15, [#allocation6], %s976_s27, %s976_s27, %s977_s28  }
  0x35   :  { %s922_s5 = scalar_lea.hbm %s1126_s3, 512 }
  0x36   :  { %p923_p10 = scmp.ne.s32.totalorder %s1126_s3, %s922_s5  ;;  %p926_p11 = scmp.lt.u32.totalorder %s922_s5, %s1126_s3 }
  0x38   :  { %p928_p12 = pnand %p926_p11, %p923_p10 }
  0x3a   :  { %931 = shalt.err (!%p928_p12)
}
  0x3b   :  { %s932_s10 = scalar_lea.vmem %s1043_s17, 512  ;;  %p937_p0 = scmp.lt.s32.totalorder %s1043_s17, %s1043_s17 }
  0x3c   :  { %p933_p13 = scmp.ne.s32.totalorder %s1043_s17, %s932_s10  ;;  %p938_p1 = scmp.lt.s32.totalorder %s932_s10, %s932_s10 }
  0x3e   :  { %p939_p2 = por %p938_p1, %p937_p0 }
  0x40   :  { %p940_p3 = pnand %p939_p2, %p933_p13 }
  0x42   :  { %943 = shalt.err (!%p940_p3)
}
  0x43   :  { %60 = dma.hbm_to_vmem [thread:$0]  %s1126_s3, 512, %s1043_s17, [#allocation9], %s976_s27, %s976_s27, %s977_s28  }
  0x44   :  { %966 = dma.done.wait [#allocation3], 512  }
  0x45   :  { %967 = vsyncadd [#allocation3], 4294966784 }
  0x46   :  { %968 = dma.done.wait [#allocation6], 2560  }
  0x47   :  { %969 = vsyncadd [#allocation6], 4294964736 }
  0x48   :  { %970 = dma.done.wait [#allocation9], 512  }
  0x49   :  { %971 = vsyncadd [#allocation9], 4294966784  ;;  %vm77_vm0 = vcmask 261120   ;;  %v73_v0 = vld [vmem:[#allocation2] sm:$0xff]  ;;  %v75_v1 = vld [vmem:[#allocation2 + $0x10] sm:$0xff]  ;;  %s980_s3 = smov [#allocation10]  }
  0x4a   :  { %v74_v2 = vld [vmem:[#allocation2 + $0x8] sm:$0xff]  ;;  %v78_v3 = vsel %vm77_vm0, %v73_v0, 0.0  ;;  %v84_v4 = vsel %vm77_vm0, %v75_v1, 0.0  ;;  %v76_v5 = vld [vmem:[#allocation2 + $0x18] sm:$0xff]  ;;  %v131_v28 = vld [vmem:[#allocation7] sm:$0xff]  ;;  %s601_s12 = sshll.u32 %s980_s3, 4  ;;  %s602_s12 = int_to_ptr.vmem [resolvable:$true] %s601_s12 }
  0x4b   :  { %79 = vadd.xlane.f32.xlu0 %v78_v3  ;;  %85 = vadd.xlane.f32.xlu1 %v84_v4  ;;  %v81_v6 = vsel %vm77_vm0, %v74_v2, 0.0  ;;  %v87_v7 = vsel %vm77_vm0, %v76_v5, 0.0  ;;  %v132_v29 = vld [vmem:[#allocation7 + $0x8] sm:$0xff]  ;;  %v133_v31 = vld [vmem:[#allocation7 + $0x10] sm:$0xff]  ;;  %v134_v32 = vld [vmem:[#allocation7 + $0x18] sm:$0xff]  ;;  %s944_s1 = scalar_lea.vmem %s602_s12, 512  ;;  %p949_p5 = scmp.lt.s32.totalorder %s602_s12, %s602_s12 }
  0x4c   :  { %v777_v30 = vpack.c.bf16 %v132_v29, %v131_v28  ;;  %v781_v33 = vpack.c.bf16 %v134_v32, %v133_v31  ;;  %v135_v34 = vld [vmem:[#allocation7 + $0x20] sm:$0xff]  ;;  %v136_v35 = vld [vmem:[#allocation7 + $0x28] sm:$0xff]  ;;  %v137_v51 = vld [vmem:[#allocation7 + $0x30] sm:$0xff]  ;;  %p945_p4 = scmp.ne.s32.totalorder %s602_s12, %s944_s1  ;;  %p950_p6 = scmp.lt.s32.totalorder %s944_s1, %s944_s1 }
  0x4d   :  { %v785_v36 = vpack.c.bf16 %v136_v35, %v135_v34  ;;  %v138_v52 = vld [vmem:[#allocation7 + $0x38] sm:$0xff]  ;;  %v139_v58 = vld [vmem:[#allocation7 + $0x40] sm:$0xff]  ;;  %v140_v59 = vld [vmem:[#allocation7 + $0x48] sm:$0xff] }
  0x4e   :  { %778 = vmatprep.subr.bf16.mxu1 %v777_v30  ;;  %v789_v56 = vpack.c.bf16 %v138_v52, %v137_v51  ;;  %v793_v62 = vpack.c.bf16 %v140_v59, %v139_v58  ;;  %v141_v63 = vld [vmem:[#allocation7 + $0x50] sm:$0xff]  ;;  %v144_v3 = vld [vmem:[#allocation7 + $0x68] sm:$0xff]  ;;  %v502_v35 = vld [vmem:[#allocation5 + $0x18] sm:$0xff]  ;;  %p951_p7 = por %p950_p6, %p949_p5 }
  0x4f   :  { %82 = vadd.xlane.f32.xlu0 %v81_v6  ;;  %88 = vadd.xlane.f32.xlu1 %v87_v7  ;;  %v146_v6 = vld [vmem:[#allocation7 + $0x78] sm:$0xff]  ;;  %v501_v34 = vld [vmem:[#allocation5 + $0x10] sm:$0xff] }
  0x50   :  { %780 = vmatpush3.bf16.msra.mxu1 %v777_v30  ;;  %p952_p8 = pnand %p951_p7, %p945_p4 }
  0x51   :  { %782 = vmatprep.subr.bf16.mxu1 %v781_v33 }
  0x54   :  { %784 = vmatpush3.bf16.msra.mxu1 %v781_v33  ;;  %v500_v33 = vld [vmem:[#allocation5 + $0x8] sm:$0xff] }
  0x55   :  { %786 = vmatprep.subr.bf16.mxu1 %v785_v36 }
  0xd8   :  { %v80_v8 = vpop.xlane.xlu0 %79  ;;  %v86_v9 = vpop.xlane.xlu1 %85 }
  0xd9   :  { %v91_v10 = vmul.f32 0.03125, %v80_v8  ;;  %v93_v11 = vmul.f32 0.03125, %v86_v9  ;;  %v499_v8 = vld [vmem:[#allocation5] sm:$0xff] }
  0xda   :  { %771 = vmatprep.mubr.f32.mxu0 %v499_v8 }
  0xdb   :  { %v95_v12 = vsub.f32 %v73_v0, %v91_v10  ;;  %v97_v13 = vsub.f32 %v75_v1, %v93_v11  ;;  %v142_v0 = vld [vmem:[#allocation7 + $0x58] sm:$0xff] }
  0xdc   :  { %v83_v14 = vpop.xlane.xlu0 %82  ;;  %v89_v15 = vpop.xlane.xlu1 %88  ;;  %v797_v1 = vpack.c.bf16 %v142_v0, %v141_v63 }
  0xdd   :  { %v92_v16 = vmul.f32 0.03125, %v83_v14  ;;  %v94_v17 = vmul.f32 0.03125, %v89_v15  ;;  %v99_v18 = vmul.f32 %v95_v12, %v95_v12  ;;  %v101_v19 = vmul.f32 %v97_v13, %v97_v13 }
  0xdf   :  { %v96_v20 = vsub.f32 %v74_v2, %v92_v16  ;;  %v98_v21 = vsub.f32 %v76_v5, %v94_v17  ;;  %v103_v22 = vsel %vm77_vm0, %v99_v18, 0.0  ;;  %v109_v23 = vsel %vm77_vm0, %v101_v19, 0.0  ;;  %v143_v2 = vld [vmem:[#allocation7 + $0x60] sm:$0xff]  ;;  %v145_v5 = vld [vmem:[#allocation7 + $0x70] sm:$0xff] }
  0xe0   :  { %104 = vadd.xlane.f32.xlu0 %v103_v22  ;;  %v801_v4 = vpack.c.bf16 %v144_v3, %v143_v2  ;;  %v805_v7 = vpack.c.bf16 %v146_v6, %v145_v5 }
  0xe1   :  { %v100_v24 = vmul.f32 %v96_v20, %v96_v20  ;;  %v102_v25 = vmul.f32 %v98_v21, %v98_v21 }
  0xe3   :  { %v106_v26 = vsel %vm77_vm0, %v100_v24, 0.0  ;;  %v112_v27 = vsel %vm77_vm0, %v102_v25, 0.0 }
  0xe4   :  { %110 = vadd.xlane.f32.xlu0 %v109_v23  ;;  %107 = vadd.xlane.f32.xlu1 %v106_v26 }
  0xe8   :  { %113 = vadd.xlane.f32.xlu1 %v112_v27 }
 0x16d   :  { %v105_v37 = vpop.xlane.xlu0 %104 }
 0x16e   :  { %v115_v38 = vmul.f32 0.03125, %v105_v37  ;;  %v503_v37 = vld [vmem:[#allocation8] sm:$0xff] }
 0x170   :  { %v119_v39 = vadd.f32 1e-05, %v115_v38 }
 0x171   :  { %v108_v40 = vpop.xlane.xlu1 %107  ;;  %v111_v41 = vpop.xlane.xlu0 %110 }
 0x172   :  { %848 = vrsqrt.f32 %v119_v39  ;;  %v116_v42 = vmul.f32 0.03125, %v108_v40  ;;  %v117_v43 = vmul.f32 0.03125, %v111_v41 }
 0x174   :  { %v120_v44 = vadd.f32 1e-05, %v116_v42  ;;  %v121_v45 = vadd.f32 1e-05, %v117_v43  ;;  %v506_v42 = vld [vmem:[#allocation8 + $0x18] sm:$0xff]  ;;  %v505_v43 = vld [vmem:[#allocation8 + $0x10] sm:$0xff] }
 0x175   :  { %v114_v46 = vpop.xlane.xlu1 %113 }
 0x176   :  { %850 = vrsqrt.f32 %v120_v44  ;;  %v118_v47 = vmul.f32 0.03125, %v114_v46 }
 0x177   :  { %852 = vrsqrt.f32 %v121_v45 }
 0x178   :  { %v122_v48 = vadd.f32 1e-05, %v118_v47 }
 0x17a   :  { %854 = vrsqrt.f32 %v122_v48 }
 0x17c   :  { %v849_v49 = vpop.eup %848 }
 0x17d   :  { %v127_v50 = vmul.f32 %v849_v49, %v95_v12 }
 0x17f   :  { %691 = vmatprep.mubr.msk.f32.mxu1 %vm77_vm0, %v127_v50 }
 0x180   :  { %v851_v53 = vpop.eup %850 }
 0x181   :  { %v853_v54 = vpop.eup %852  ;;  %v128_v55 = vmul.f32 %v851_v53, %v96_v20 }
 0x182   :  { %v129_v57 = vmul.f32 %v853_v54, %v97_v13 }
 0x183   :  { %692 = vmatmul.mubr.msk.f32.vlgmr.msra.gmra.mrb[0].mxu1 %vm77_vm0, %v128_v55 }
 0x184   :  { %v855_v60 = vpop.eup %854  ;;  %788 = vmatpush3.bf16.msra.mxu1 %v785_v36  ;;  %694 = vmatprep.mubr.msk.f32.mxu1 %vm77_vm0, %v129_v57  ;;  %v504_v36 = vld [vmem:[#allocation8 + $0x8] sm:$0xff] }
 0x185   :  { %790 = vmatprep.subr.bf16.mxu1 %v789_v56  ;;  %v130_v61 = vmul.f32 %v855_v60, %v98_v21 }
 0x187   :  { %695 = vmatmul.mubr.msk.f32.gmra.mrb[2].mxu1 %vm77_vm0, %v130_v61 }
 0x188   :  { %792 = vmatpush3.bf16.msra.mxu1 %v789_v56  ;;  %705 = vmatprep.mubr.msk.f32.mxu1 %vm77_vm0, %v127_v50 }
 0x189   :  { %794 = vmatprep.subr.bf16.mxu1 %v793_v62 }
 0x18b   :  { %706 = vmatmul.mubr.msk.f32.vlgmr.msra.gmra.mrb[4].mxu1 %vm77_vm0, %v128_v55 }
 0x18c   :  { %796 = vmatpush3.bf16.msra.mxu1 %v793_v62  ;;  %708 = vmatprep.mubr.msk.f32.mxu1 %vm77_vm0, %v129_v57 }
 0x18d   :  { %798 = vmatprep.subr.bf16.mxu1 %v797_v1 }
 0x18f   :  { %709 = vmatmul.mubr.msk.f32.gmra.mrb[6].mxu1 %vm77_vm0, %v130_v61 }
 0x190   :  { %800 = vmatpush3.bf16.msra.mxu1 %v797_v1  ;;  %719 = vmatprep.mubr.msk.f32.mxu1 %vm77_vm0, %v127_v50 }
 0x191   :  { %802 = vmatprep.subr.bf16.mxu1 %v801_v4 }
 0x193   :  { %720 = vmatmul.mubr.msk.f32.vlgmr.msra.gmra.mrb[8].mxu1 %vm77_vm0, %v128_v55 }
 0x194   :  { %804 = vmatpush3.bf16.msra.mxu1 %v801_v4  ;;  %722 = vmatprep.mubr.msk.f32.mxu1 %vm77_vm0, %v129_v57 }
 0x195   :  { %806 = vmatprep.subr.bf16.mxu1 %v805_v7 }
 0x197   :  { %723 = vmatmul.mubr.msk.f32.gmra.mrb[10].mxu1 %vm77_vm0, %v130_v61 }
 0x198   :  { %808 = vmatpush3.bf16.msra.mxu1 %v805_v7  ;;  %733 = vmatprep.mubr.msk.f32.mxu1 %vm77_vm0, %v127_v50 }
 0x19b   :  { %734 = vmatmul.mubr.msk.f32.vlgmr.msra.gmra.mrb[12].mxu1 %vm77_vm0, %v128_v55 }
 0x19c   :  { %736 = vmatprep.mubr.msk.f32.mxu1 %vm77_vm0, %v129_v57 }
 0x19f   :  { %737 = vmatmul.mubr.msk.f32.gmra.mrb[14].mxu1 %vm77_vm0, %v130_v61 }
 0x256   :  { %v693_v9 = vpop.f32.mrb[0].mxu1 }
 0x257   :  { %v225_v10 = vpop.f32.mrb[1].mxu1 }
 0x258   :  { %v809_v11 = vpack.c.bf16 %v693_v9, %v225_v10 }
 0x25a   :  { %v696_v12 = vpop.f32.mrb[2].mxu1  ;;  %810 = vmatprep.subr.bf16.mxu0 %v809_v11 }
 0x25b   :  { %v235_v13 = vpop.f32.mrb[3].mxu1  ;;  %812 = vmatpush3.bf16.msra.mxu0 %v809_v11 }
 0x25c   :  { %v813_v14 = vpack.c.bf16 %v696_v12, %v235_v13 }
 0x25e   :  { %v707_v15 = vpop.f32.mrb[4].mxu1  ;;  %814 = vmatprep.subr.bf16.mxu0 %v813_v14 }
 0x25f   :  { %v310_v16 = vpop.f32.mrb[5].mxu1  ;;  %816 = vmatpush3.bf16.msra.mxu0 %v813_v14 }
 0x260   :  { %v817_v17 = vpack.c.bf16 %v707_v15, %v310_v16 }
 0x262   :  { %v710_v18 = vpop.f32.mrb[6].mxu1  ;;  %818 = vmatprep.subr.bf16.mxu0 %v817_v17 }
 0x263   :  { %v320_v19 = vpop.f32.mrb[7].mxu1  ;;  %820 = vmatpush3.bf16.msra.mxu0 %v817_v17 }
 0x264   :  { %v821_v20 = vpack.c.bf16 %v710_v18, %v320_v19 }
 0x266   :  { %v721_v21 = vpop.f32.mrb[8].mxu1  ;;  %822 = vmatprep.subr.bf16.mxu0 %v821_v20 }
 0x267   :  { %v395_v22 = vpop.f32.mrb[9].mxu1  ;;  %824 = vmatpush3.bf16.msra.mxu0 %v821_v20 }
 0x268   :  { %v825_v23 = vpack.c.bf16 %v721_v21, %v395_v22 }
 0x26a   :  { %v724_v24 = vpop.f32.mrb[10].mxu1  ;;  %826 = vmatprep.subr.bf16.mxu0 %v825_v23 }
 0x26b   :  { %v405_v25 = vpop.f32.mrb[11].mxu1  ;;  %828 = vmatpush3.bf16.msra.mxu0 %v825_v23 }
 0x26c   :  { %v829_v26 = vpack.c.bf16 %v724_v24, %v405_v25 }
 0x26e   :  { %v735_v27 = vpop.f32.mrb[12].mxu1  ;;  %830 = vmatprep.subr.bf16.mxu0 %v829_v26 }
 0x26f   :  { %v480_v28 = vpop.f32.mrb[13].mxu1  ;;  %832 = vmatpush3.bf16.msra.mxu0 %v829_v26 }
 0x270   :  { %v833_v29 = vpack.c.bf16 %v735_v27, %v480_v28 }
 0x272   :  { %v738_v30 = vpop.f32.mrb[14].mxu1  ;;  %834 = vmatprep.subr.bf16.mxu0 %v833_v29 }
 0x273   :  { %v490_v31 = vpop.f32.mrb[15].mxu1  ;;  %836 = vmatpush3.bf16.msra.mxu0 %v833_v29 }
 0x274   :  { %v837_v32 = vpack.c.bf16 %v738_v30, %v490_v31 }
 0x276   :  { %838 = vmatprep.subr.bf16.mxu0 %v837_v32 }
 0x277   :  { %840 = vmatpush3.bf16.msra.mxu0 %v837_v32 }
 0x27a   :  { %772 = vmatmul.mubr.f32.vlgmr.msra.gmra.mrb[0].mxu0 %v500_v33 }
 0x27b   :  { %774 = vmatprep.mubr.f32.mxu0 %v501_v34 }
 0x27e   :  { %775 = vmatmul.mubr.f32.gmra.mrb[2].mxu0 %v502_v35 }
 0x34d   :  { %v773_v38 = vpop.f32.mrb[0].mxu0 }
 0x34e   :  { %v579_v39 = vadd.f32 %v773_v38, %v504_v36  ;;  %v573_v40 = vpop.f32.mrb[1].mxu0 }
 0x34f   :  { %v574_v41 = vadd.f32 %v573_v40, %v503_v37 }
 0x350   :  { %593 = vst.msk [vmem:[#allocation10 + $0x8] sm:$0xff] %vm77_vm0, %v579_v39 }
 0x351   :  { %592 = vst.msk [vmem:[#allocation10] sm:$0xff] %vm77_vm0, %v574_v41  ;;  %v776_v44 = vpop.f32.mrb[2].mxu0 }
 0x352   :  { %v589_v45 = vadd.f32 %v776_v44, %v506_v42  ;;  %v583_v46 = vpop.f32.mrb[3].mxu0 }
 0x353   :  { %v584_v47 = vadd.f32 %v583_v46, %v505_v43 }
 0x354   :  { %595 = vst.msk [vmem:[#allocation10 + $0x18] sm:$0xff] %vm77_vm0, %v589_v45 }
 0x355   :  { %594 = vst.msk [vmem:[#allocation10 + $0x10] sm:$0xff] %vm77_vm0, %v584_v47 }
 0x356   :  { %955 = shalt.err (!%p952_p8)
}
 0x357   :  { %s956_s15 = scalar_lea.hbm %s1127_s4, 512 }
 0x358   :  { %p957_p9 = scmp.ne.s32.totalorder %s1127_s4, %s956_s15  ;;  %p960_p10 = scmp.lt.u32.totalorder %s956_s15, %s1127_s4 }
 0x35a   :  { %p962_p11 = pnand %p960_p10, %p957_p9 }
 0x35c   :  { %965 = shalt.err (!%p962_p11)
}
 0x35d   :  { %607 = dma.vmem_to_hbm [thread:$0]  %s602_s12, 512, %s1127_s4, [#allocation4], %s976_s27, %s976_s27, %s977_s28  }
 0x35e   :  { %972 = dma.done.wait [#allocation4], 512  }
 0x35f   :  { %973 = vsyncadd [#allocation4], 4294966784 }
 0x360   :  { %611 = vsyncpa [#allocation3], 1 }
 0x361   :  { %612 = vsyncpa [#allocation6], 1 }
 0x362   :  { %613 = vsyncpa [#allocation9], 1 }
 0x363   :  { %614 = vsyncpa [#allocation4], 1 }

</bundles_post_ra>
